<compile_context>
chip_gen: v7x
topology: tpu7x:2x2x1
jax: 0.10.0
libtpu: 0.0.40
codegen_flags: <defaults>
</compile_context>

<pallas_src>
import functools

import jax
import jax.numpy as jnp
from jax.experimental import pallas as pl
from jax.experimental.pallas import tpu as pltpu

D = 768          # encoder hidden dim (fixed by the module: LayerNorm(768), Linear(768, C))
LN_EPS = 1e-5    # torch.nn.LayerNorm default
C_PAD = 128      # lane-dense class dimension
TB_MAX = 16      # default batch rows per grid step (safe on v5e/v6e/v7x VMEM budgets;
                 # on v6e/v7x with large batches tb_max=32 is a further win)


def _pick_token_chunk(n, max_chunk=64):
    """Largest divisor of n that is <= max_chunk, preferring multiples of 8 (sublanes)."""
    if n <= max_chunk:
        return n
    for c in range(max_chunk, 7, -1):
        if n % c == 0 and c % 8 == 0:
            return c
    for c in range(max_chunk, 0, -1):
        if n % c == 0:
            return c
    return n


def _smit_head_kernel(x_ref, w_ref, b_ref, out_ref, *, tn):
    """Fused LayerNorm -> token-mean-pool -> Linear for one batch tile.

    x_ref:   (TB, N, D)   encoder tokens (bf16/f32; upcast per chunk to f32)
    w_ref:   (D, C_pad)   fc weight with LN gamma folded in, bf16, lane-padded
    b_ref:   (1, C_pad)   fc bias with LN beta folded in, f32, lane-padded
    out_ref: (TB, C_pad)  f32 logits (padded class columns are zero)
    """
    tb, n, d = x_ref.shape
    n_chunks = n // tn
    inv_d = jnp.float32(1.0 / d)
    inv_n = jnp.float32(1.0 / n)

    def chunk(ci, acc):
        start = pl.multiple_of(ci * tn, tn)
        xc = x_ref[:, pl.ds(start, tn), :].astype(jnp.float32)        # (tb, tn, d)
        # Two-pass (torch-style) LayerNorm statistics per token: center first,
        # then variance of the centered values (no E[x^2]-mu^2 cancellation).
        mu = jnp.sum(xc, axis=-1, keepdims=True) * inv_d              # (tb, tn, 1)
        cen = xc - mu
        var = jnp.sum(cen * cen, axis=-1, keepdims=True) * inv_d
        r = jax.lax.rsqrt(var + LN_EPS)                               # EUP slot
        # mean_N((x-mu)*r) needs only the running sum of r*(x-mu); xn is never
        # materialized at full (TB, N, D) size.
        return acc + jnp.sum(r * cen, axis=1)                         # (tb, d)

    acc = jax.lax.fori_loop(0, n_chunks, chunk,
                            jnp.zeros((tb, d), jnp.float32),
                            unroll=(n_chunks <= 4))

    # transpose(1,2) + AdaptiveAvgPool1d(1) + flatten == mean over tokens.
    pooled = (acc * inv_n).astype(w_ref.dtype)                        # (tb, d) bf16

    # Linear with gamma/beta already folded into W'/b' (bf16 MXU, f32 accumulate).
    logits = jnp.dot(pooled, w_ref[...], preferred_element_type=jnp.float32)
    out_ref[...] = (logits + b_ref[...]).astype(out_ref.dtype)


def fold_head_params(ln_gamma, ln_beta, fc_w, fc_b):
    """Fold LayerNorm affine into the FC layer (exact, since pooling is a mean).

    mean_N(xn*g + b) @ W + c  ==  mean_N(xn) @ (g[:,None]*W) + (b @ W + c)

    Call ONCE at parameter-load time, not per forward call.
    """
    C = fc_w.shape[1]
    w_eff = ln_gamma.astype(jnp.float32)[:, None] * fc_w.astype(jnp.float32)   # (D, C)
    b_eff = ln_beta.astype(jnp.float32) @ fc_w.astype(jnp.float32) \
        + fc_b.astype(jnp.float32)                                             # (C,)

    # Pad the class dim to a lane-dense multiple of 128.
    c_pad = max(C_PAD, ((C + 127) // 128) * 128)
    w_eff = jnp.pad(w_eff, ((0, 0), (0, c_pad - C))).astype(jnp.bfloat16)      # bf16 MXU operand
    b_eff = jnp.pad(b_eff, (0, c_pad - C)).reshape(1, c_pad)                   # f32 exact bias
    return {"w_eff": w_eff, "b_eff": b_eff, "n_classes": C}


def smit_classifier_head(tokens, folded, *, tb_max=TB_MAX):
    """tokens: (B, N, D) float32/bf16 encoder output.  Returns logits (B, C) f32."""
    B, N, d = tokens.shape
    assert d == D
    w_eff, b_eff, C = folded["w_eff"], folded["b_eff"], folded["n_classes"]
    c_pad = w_eff.shape[1]

    # Batch tile: whole batch if small (no read amplification, no padding);
    # otherwise a sublane-aligned tile with a masked partial last block.
    if B <= tb_max:
        tb = B
    else:
        tb = tb_max
        assert tb % 8 == 0, "tb_max must be a multiple of 8 when B > tb_max"
    grid = (pl.cdiv(B, tb),)

    tn = _pick_token_chunk(N)
    kernel = functools.partial(_smit_head_kernel, tn=tn)

    flops = int(6 * B * N * D + 2 * B * D * c_pad)
    bytes_accessed = int(B * N * D * tokens.dtype.itemsize
                         + D * c_pad * w_eff.dtype.itemsize
                         + c_pad * 4 + B * c_pad * 4)

    out = pl.pallas_call(
        kernel,
        out_shape=jax.ShapeDtypeStruct((B, c_pad), jnp.float32),
        grid_spec=pltpu.PrefetchScalarGridSpec(
            num_scalar_prefetch=0,
            grid=grid,
            in_specs=[
                pl.BlockSpec((tb, N, D), lambda i: (i, 0, 0)),   # tb token rows per step
                pl.BlockSpec((D, c_pad), lambda i: (0, 0)),      # folded fc weight (invariant)
                pl.BlockSpec((1, c_pad), lambda i: (0, 0)),      # folded fc bias (invariant)
            ],
            out_specs=pl.BlockSpec((tb, c_pad), lambda i: (i, 0)),
        ),
        compiler_params=pltpu.CompilerParams(
            dimension_semantics=("parallel",),                   # batch axis across TCs
            vmem_limit_bytes=(48 << 20) if tb > 16 else (32 << 20),
        ),
        cost_estimate=pl.CostEstimate(
            flops=flops,
            transcendentals=int(B * N),                          # rsqrt per token
            bytes_accessed=bytes_accessed),
    )(tokens, w_eff, b_eff)

    return out[:, :C]


def smit_classifier_forward(x_vol, tokens, folded_head, interpolate=False):
    """Full forward. x_vol: (B, 1, D, H, W) NCDHW volume (PyTorch convention)."""
    if interpolate:
        # TODO(synk): nnf.interpolate(..., size=(96,96,96), mode='trilinear') branch not implemented.
        x_pre = x_vol
    else:
        # nnf.pad(x, (2, 2, 2, 2, 2, 2)) pads the last three (spatial) dims by 2 on each side.
        x_pre = jnp.pad(x_vol, ((0, 0), (0, 0), (2, 2), (2, 2), (2, 2)))

    # TODO(synk): SMIT SwinTransformer_Unetr encoder (third-party, checkpoint-loaded) is not
    # reproducible in-script; `tokens` stands in for its (B, N, 768) output.
    del x_pre

    return smit_classifier_head(tokens, folded_head)


def init_params(key, n_classes):
    # nn.LayerNorm(768): weight = 1, bias = 0
    ln_gamma = jnp.ones((D,), jnp.float32)
    ln_beta = jnp.zeros((D,), jnp.float32)
    # nn.Linear(768, n_classes): U(-1/sqrt(768), 1/sqrt(768)) for weight and bias
    bound = 1.0 / jnp.sqrt(jnp.float32(D))
    kw, kb = jax.random.split(key)
    fc_w = jax.random.uniform(kw, (D, n_classes), jnp.float32, -bound, bound)
    fc_b = jax.random.uniform(kb, (n_classes,), jnp.float32, -bound, bound)
    return {"ln_gamma": ln_gamma, "ln_beta": ln_beta, "fc_w": fc_w, "fc_b": fc_b}


def _reference_head(tokens, params):
    """Torch-style f32 reference: two-pass LayerNorm -> mean pool -> Linear."""
    t = tokens.astype(jnp.float32)
    mu = jnp.mean(t, axis=-1, keepdims=True)
    var = jnp.mean((t - mu) ** 2, axis=-1, keepdims=True)
    y = (t - mu) / jnp.sqrt(var + LN_EPS) * params["ln_gamma"] + params["ln_beta"]
    return jnp.mean(y, axis=1) @ params["fc_w"] + params["fc_b"]


if __name__ == "__main__":
    key = jax.random.PRNGKey(0)
    k_vol, k_tok, k_par, k_tok2 = jax.random.split(key, 4)

    B = 2            # batch
    N_TOKENS = 8     # small stand-in for the encoder's 216 final-stage tokens
    N_CLASSES = 11   # e.g. OrganMNIST3D

    # Raw MedMNIST-style volume (small spatial size), NCDHW like PyTorch.
    x_vol = jax.random.normal(k_vol, (B, 1, 12, 12, 12), jnp.float32)
    # Synthetic encoder output tokens; kept in bf16 to halve HBM read traffic
    # (the kernel upcasts per chunk to f32 internally).
    tokens = jax.random.normal(k_tok, (B, N_TOKENS, D), jnp.float32).astype(jnp.bfloat16)
    params = init_params(k_par, N_CLASSES)
    folded = fold_head_params(params["ln_gamma"], params["ln_beta"],
                              params["fc_w"], params["fc_b"])   # folded ONCE, reused per call

    logits = smit_classifier_forward(x_vol, tokens, folded, interpolate=False)
    logits = jax.block_until_ready(logits)
    assert logits.shape == (B, N_CLASSES), logits.shape

    ref = _reference_head(tokens, params)
    err = float(jnp.max(jnp.abs(logits - ref)))
    assert jnp.allclose(logits, ref, atol=5e-3, rtol=5e-3), err

    # Second check: exercises the cdiv grid with a masked partial last block
    # (B=10, tb=8 -> grid of 2, last block half-valid) and a multi-chunk token
    # loop (N=72 -> 3 chunks of 24).
    B2, N2 = 10, 72
    tokens2 = jax.random.normal(k_tok2, (B2, N2, D), jnp.float32).astype(jnp.bfloat16)
    logits2 = jax.block_until_ready(smit_classifier_head(tokens2, folded, tb_max=8))
    assert logits2.shape == (B2, N_CLASSES), logits2.shape
    ref2 = _reference_head(tokens2, params)
    err2 = float(jnp.max(jnp.abs(logits2 - ref2)))
    assert jnp.allclose(logits2, ref2, atol=5e-3, rtol=5e-3), err2

    print("KERNEL_OK")
</pallas_src>

<mosaic_0001>
module attributes {stable_mosaic.version = 11 : i64} {
  func.func @_smit_head_kernel(%arg0: i32, %arg1: memref<2x8x768xbf16, #tpu.memory_space<vmem>>, %arg2: memref<768x128xbf16, #tpu.memory_space<vmem>>, %arg3: memref<1x128xf32, #tpu.memory_space<vmem>>, %arg4: memref<2x128xf32, #tpu.memory_space<vmem>>) attributes {dimension_semantics = [#tpu.dimension_semantics<parallel>], iteration_bounds = array<i64: 1>, scalar_prefetch = 0 : i64, scratch_operands = 0 : i64, tpu.core_type = #tpu.core_type<tc>, window_params = [{transform_indices = @transform_0, window_bounds = array<i64: 2, 8, 768>}, {pipeline_mode = #tpu.pipeline_mode<synchronous>, transform_indices = @transform_1, window_bounds = array<i64: 768, 128>}, {pipeline_mode = #tpu.pipeline_mode<synchronous>, transform_indices = @transform_2, window_bounds = array<i64: 1, 128>}, {transform_indices = @transform_3, window_bounds = array<i64: 2, 128>}]} {
    %cst = arith.constant 0.000000e+00 : f32
    %0 = vector.broadcast %cst : f32 to vector<2x768xf32>
    %cst_0 = arith.constant 0.00130208337 : f32
    %c0_i32 = arith.constant 0 : i32
    %c8_i32 = arith.constant 8 : i32
    %1 = arith.muli %c0_i32, %c8_i32 : i32
    %2 = tpu.assume_multiple %1, 8 : i32
    %c0 = arith.constant 0 : index
    %3 = arith.index_cast %2 : i32 to index
    %c0_1 = arith.constant 0 : index
    %4 = vector.load %arg1[%c0, %3, %c0_1] : memref<2x8x768xbf16, #tpu.memory_space<vmem>>, vector<2x8x768xbf16>
    %5 = arith.extf %4 : vector<2x8x768xbf16> to vector<2x8x768xf32>
    %cst_2 = arith.constant dense<0.000000e+00> : vector<2x8xf32>
    %6 = vector.multi_reduction <add>, %5, %cst_2 [2] : vector<2x8x768xf32> to vector<2x8xf32>
    %7 = vector.shape_cast %6 : vector<2x8xf32> to vector<2x8x1xf32>
    %8 = vector.broadcast %cst_0 : f32 to vector<2x8x1xf32>
    %9 = arith.mulf %7, %8 : vector<2x8x1xf32>
    %10 = vector.broadcast %9 : vector<2x8x1xf32> to vector<2x8x768xf32>
    %11 = arith.subf %5, %10 : vector<2x8x768xf32>
    %12 = arith.mulf %11, %11 : vector<2x8x768xf32>
    %cst_3 = arith.constant dense<0.000000e+00> : vector<2x8xf32>
    %13 = vector.multi_reduction <add>, %12, %cst_3 [2] : vector<2x8x768xf32> to vector<2x8xf32>
    %14 = vector.shape_cast %13 : vector<2x8xf32> to vector<2x8x1xf32>
    %15 = vector.broadcast %cst_0 : f32 to vector<2x8x1xf32>
    %16 = arith.mulf %14, %15 : vector<2x8x1xf32>
    %cst_4 = arith.constant 9.99999974E-6 : f32
    %17 = vector.broadcast %cst_4 : f32 to vector<2x8x1xf32>
    %18 = arith.addf %16, %17 : vector<2x8x1xf32>
    %19 = math.rsqrt %18 : vector<2x8x1xf32>
    %20 = vector.broadcast %19 : vector<2x8x1xf32> to vector<2x8x768xf32>
    %21 = arith.mulf %20, %11 : vector<2x8x768xf32>
    %cst_5 = arith.constant dense<0.000000e+00> : vector<2x768xf32>
    %22 = vector.multi_reduction <add>, %21, %cst_5 [1] : vector<2x8x768xf32> to vector<2x768xf32>
    %23 = arith.addf %0, %22 : vector<2x768xf32>
    %c1_i32 = arith.constant 1 : i32
    %cst_6 = arith.constant 1.250000e-01 : f32
    %24 = vector.broadcast %cst_6 : f32 to vector<2x768xf32>
    %25 = arith.mulf %23, %24 : vector<2x768xf32>
    %26 = arith.truncf %25 : vector<2x768xf32> to vector<2x768xbf16>
    %c0_7 = arith.constant 0 : index
    %c0_8 = arith.constant 0 : index
    %27 = vector.load %arg2[%c0_7, %c0_8] : memref<768x128xbf16, #tpu.memory_space<vmem>>, vector<768x128xbf16>
    %cst_9 = arith.constant dense<0.000000e+00> : vector<2x128xf32>
    %28 = tpu.matmul %26, %27, %cst_9 {dimension_numbers = #tpu.dot_dimension_numbers<[1], [0], [0], [1], [0, 0, 1, 1], [], []>} : vector<2x768xbf16>, vector<768x128xbf16>, vector<2x128xf32> -> vector<2x128xf32>
    %c0_10 = arith.constant 0 : index
    %c0_11 = arith.constant 0 : index
    %29 = vector.load %arg3[%c0_10, %c0_11] : memref<1x128xf32, #tpu.memory_space<vmem>>, vector<1x128xf32>
    %30 = vector.broadcast %29 : vector<1x128xf32> to vector<2x128xf32>
    %31 = arith.addf %28, %30 : vector<2x128xf32>
    %c0_12 = arith.constant 0 : index
    %c0_13 = arith.constant 0 : index
    %32 = vector.load %arg4[%c0_12, %c0_13] : memref<2x128xf32, #tpu.memory_space<vmem>>, vector<2x128xf32>
    tpu.vector_store %arg4[%c0_12, %c0_13], %31 {strides = array<i32>} : memref<2x128xf32, #tpu.memory_space<vmem>>, vector<2x128xf32>,
    return
  }
  func.func @transform_0(%arg0: i32) -> (i32, i32, i32) {
    %c0_i32 = arith.constant 0 : i32
    %c0_i32_0 = arith.constant 0 : i32
    %c0_i32_1 = arith.constant 0 : i32
    return %arg0, %c0_i32, %c0_i32_0 : i32, i32, i32
  }
  func.func @transform_1(%arg0: i32) -> (i32, i32) {
    %c0_i32 = arith.constant 0 : i32
    %c0_i32_0 = arith.constant 0 : i32
    %c0_i32_1 = arith.constant 0 : i32
    return %c0_i32, %c0_i32_0 : i32, i32
  }
  func.func @transform_2(%arg0: i32) -> (i32, i32) {
    %c0_i32 = arith.constant 0 : i32
    %c0_i32_0 = arith.constant 0 : i32
    %c0_i32_1 = arith.constant 0 : i32
    return %c0_i32, %c0_i32_0 : i32, i32
  }
  func.func @transform_3(%arg0: i32) -> (i32, i32) {
    %c0_i32 = arith.constant 0 : i32
    %c0_i32_0 = arith.constant 0 : i32
    return %arg0, %c0_i32 : i32, i32
  }
}

</mosaic_0001>

<bundles_post_ra>
// kernel: tpu_custom_call.1
= control target key start
LH: loop header
LB: loop body
LE: loop exit
PB: predicated region body
PF: predicated region fallthrough
CT: control target
= control target key end

     0   :  { %8 = vsyncpa [#allocation3], 0  ;;  %s1212_s0 = inlined_call_operand.hbm [shape: bf16[2,8,768], index: 0, kind: input, shape index: {}]   ;;  %s1213_s1 = inlined_call_operand.hbm [shape: bf16[768,128], index: 1, kind: input, shape index: {}]   ;;  %s1214_s2 = inlined_call_operand.vmem [shape: f32[1,128], index: 2, kind: input, shape index: {}]   ;;  %s1215_s3 = inlined_call_operand.hbm [shape: f32[2,128], index: 3, kind: output, shape index: {}]  }
   0x1   :  { %9 = vsyncpa [#allocation6], 0 }
   0x2   :  { %10 = vsyncpa [#allocation4], 0  ;;  %s1062_s12 = smov [#allocation2]   ;;  %s990_s16 = scalar_lea.hbm %s1212_s0, 768 }
   0x3   :  { %s16_s13 = sshll.u32 %s1062_s12, 4  ;;  %p991_p0 = scmp.ne.s32.totalorder %s1212_s0, %s990_s16  ;;  %s17_s13 = int_to_ptr.vmem [resolvable:$true] %s16_s13 }
   0x4   :  { %p994_p1 = scmp.lt.u32.totalorder %s990_s16, %s1212_s0 }
   0x6   :  { %p996_p2 = pnand %p994_p1, %p991_p0 }
   0x8   :  { %999 = shalt.err (!%p996_p2)
}
   0x9   :  { %s1000_s21 = scalar_lea.vmem %s17_s13, 768  ;;  %p1005_p4 = scmp.lt.s32.totalorder %s17_s13, %s17_s13 }
   0xa   :  { %p1001_p3 = scmp.ne.s32.totalorder %s17_s13, %s1000_s21  ;;  %p1006_p5 = scmp.lt.s32.totalorder %s1000_s21, %s1000_s21 }
   0xc   :  { %p1007_p6 = por %p1006_p5, %p1005_p4 }
   0xe   :  { %p1008_p7 = pnand %p1007_p6, %p1001_p3 }
  0x10   :  { %1011 = shalt.err (!%p1008_p7)
}
  0x11   :  { %s1063_s22 = smov 384   ;;  %s1064_s23 = smov 24  }
  0x12   :  { %22 = dma.hbm_to_vmem [thread:$0]  %s1212_s0, 768, %s17_s13, [#allocation3], %s1063_s22, %s1063_s22, %s1064_s23  }
  0x13   :  { %s1065_s26 = smov [#allocation5]   ;;  %s1012_s30 = scalar_lea.hbm %s1213_s1, 6144 }
  0x14   :  { %s28_s27 = sshll.u32 %s1065_s26, 4  ;;  %p1013_p8 = scmp.ne.s32.totalorder %s1213_s1, %s1012_s30  ;;  %s29_s27 = int_to_ptr.vmem [resolvable:$true] %s28_s27 }
  0x15   :  { %p1016_p9 = scmp.lt.u32.totalorder %s1012_s30, %s1213_s1 }
  0x17   :  { %p1018_p10 = pnand %p1016_p9, %p1013_p8 }
  0x19   :  { %1021 = shalt.err (!%p1018_p10)
}
  0x1a   :  { %s1022_s8 = scalar_lea.vmem %s29_s27, 6144  ;;  %p1027_p12 = scmp.lt.s32.totalorder %s29_s27, %s29_s27 }
  0x1b   :  { %p1023_p11 = scmp.ne.s32.totalorder %s29_s27, %s1022_s8  ;;  %p1028_p13 = scmp.lt.s32.totalorder %s1022_s8, %s1022_s8 }
  0x1d   :  { %p1029_p0 = por %p1028_p13, %p1027_p12 }
  0x1f   :  { %p1030_p1 = pnand %p1029_p0, %p1023_p11 }
  0x21   :  { %1033 = shalt.err (!%p1030_p1)
}
  0x22   :  { %s1066_s0 = smov 64   ;;  %s1067_s9 = smov 4  }
  0x23   :  { %34 = dma.hbm_to_vmem [thread:$0]  %s1213_s1, 6144, %s29_s27, [#allocation6], %s1066_s0, %s1066_s0, %s1067_s9  }
  0x24   :  { %1056 = dma.done.wait [#allocation3], 768  }
  0x25   :  { %1057 = vsyncadd [#allocation3], 4294966528 }
  0x26   :  { %1058 = dma.done.wait [#allocation6], 6144  }
  0x27   :  { %1059 = vsyncadd [#allocation6], 4294961152  ;;  %v47_v0 = vld [vmem:[#allocation2] sm:$0xff]  ;;  %v48_v1 = vld [vmem:[#allocation2 + $0x8] sm:$0xff]  ;;  %vm372_vm0 = vcmask 1041409   ;;  %s1068_s13 = smov [#allocation7]  }
  0x28   :  { %v49_v2 = vld [vmem:[#allocation2 + $0x10] sm:$0xff]  ;;  %v53_v3 = vunpack.c.l.bf16 %v47_v0  ;;  %v54_v4 = vunpack.c.h.bf16 %v47_v0  ;;  %v55_v5 = vunpack.c.l.bf16 %v48_v1  ;;  %v50_v6 = vld [vmem:[#allocation2 + $0x18] sm:$0xff]  ;;  %v51_v7 = vld [vmem:[#allocation2 + $0x20] sm:$0xff]  ;;  %v56_v11 = vunpack.c.h.bf16 %v48_v1  ;;  %s806_s14 = sshll.u32 %s1068_s13, 4  ;;  %s807_s14 = int_to_ptr.vmem [resolvable:$true] %s806_s14 }
  0x29   :  { %v52_v8 = vld [vmem:[#allocation2 + $0x28] sm:$0xff]  ;;  %v59_v9 = vunpack.c.l.bf16 %v50_v6  ;;  %v60_v10 = vunpack.c.h.bf16 %v50_v6  ;;  %v61_v13 = vunpack.c.l.bf16 %v51_v7  ;;  %v62_v14 = vunpack.c.h.bf16 %v51_v7  ;;  %v942_v6 = vld [vmem:[#allocation5 + $0x48] sm:$0xff]   ;;  %p1039_p3 = scmp.lt.s32.totalorder %s807_s14, %s807_s14 }
  0x2a   :  { %v65_v12 = vadd.f32 %v54_v4, %v53_v3  ;;  %v57_v16 = vunpack.c.l.bf16 %v49_v2  ;;  %v63_v18 = vunpack.c.l.bf16 %v52_v8  ;;  %v58_v20 = vunpack.c.h.bf16 %v49_v2  ;;  %v938_v2 = vld [vmem:[#allocation5 + $0x40] sm:$0xff]   ;;  %v944_v7 = vld [vmem:[#allocation5 + $0xc8] sm:$0xff]  }
  0x2b   :  { %v72_v15 = vadd.f32 %v60_v10, %v59_v9  ;;  %v64_v24 = vunpack.c.h.bf16 %v52_v8  ;;  %865 = vmatprep.subr.bf16.mxu0 %v938_v2  ;;  %v943_v8 = vld [vmem:[#allocation5 + $0x8] sm:$0xff]  }
  0x2c   :  { %v66_v17 = vadd.f32 %v65_v12, %v55_v5  ;;  %v947_v12 = vld [vmem:[#allocation5 + $0x10] sm:$0xff]  }
  0x2d   :  { %v73_v19 = vadd.f32 %v72_v15, %v61_v13  ;;  %v952_v15 = vld [vmem:[#allocation5 + $0xd8] sm:$0xff]  }
  0x2e   :  { %v67_v21 = vadd.f32 %v66_v17, %v56_v11  ;;  %v953_v17 = vld [vmem:[#allocation5 + $0x98] sm:$0xff]  }
  0x2f   :  { %v74_v22 = vadd.f32 %v73_v19, %v62_v14  ;;  %v956_v19 = vld [vmem:[#allocation5 + $0xe0] sm:$0xff]  }
  0x30   :  { %v68_v23 = vadd.f32 %v67_v21, %v57_v16  ;;  %v957_v21 = vld [vmem:[#allocation5 + $0xa0] sm:$0xff]  }
  0x31   :  { %v75_v25 = vadd.f32 %v74_v22, %v63_v18  ;;  %v958_v22 = vld [vmem:[#allocation5 + $0x68] sm:$0xff]  }
  0x32   :  { %v69_v26 = vadd.f32 %v68_v23, %v58_v20  ;;  %v960_v23 = vld [vmem:[#allocation5 + $0xe8] sm:$0xff]  }
  0x33   :  { %v76_v27 = vadd.f32 %v75_v25, %v64_v24  ;;  %v961_v25 = vld [vmem:[#allocation5 + $0xa8] sm:$0xff]  }
  0x34   :  { %70 = vadd.xlane.f32.xlu0 %v69_v26  ;;  %v962_v26 = vld [vmem:[#allocation5 + $0x70] sm:$0xff]  }
  0x38   :  { %77 = vadd.xlane.f32.xlu0 %v76_v27  ;;  %v964_v27 = vld [vmem:[#allocation5 + $0xf0] sm:$0xff]  }
  0xc1   :  { %v71_v28 = vpop.xlane.xlu0 %70 }
  0xc2   :  { %v79_v29 = vmul.f32 0.0013020834, %v71_v28  ;;  %v963_v28 = vld [vmem:[#allocation5 + $0x30] sm:$0xff]  }
  0xc4   :  { %v1113_v30 = vsub.f32 %v53_v3, %v79_v29  ;;  %v1115_v31 = vsub.f32 %v54_v4, %v79_v29  ;;  %v1117_v32 = vsub.f32 %v55_v5, %v79_v29  ;;  %v1119_v34 = vsub.f32 %v56_v11, %v79_v29  ;;  %v939_v3 = vld [vmem:[#allocation5] sm:$0xff]   ;;  %v948_v11 = vld [vmem:[#allocation5 + $0xd0] sm:$0xff]  }
  0xc5   :  { %v78_v33 = vpop.xlane.xlu0 %77  ;;  %v1125_v38 = vsub.f32 %v57_v16, %v79_v29  ;;  %v1135_v44 = vsub.f32 %v58_v20, %v79_v29  ;;  %v940_v4 = vld [vmem:[#allocation5 + $0xc0] sm:$0xff]   ;;  %866 = vmatpush3.bf16.msra.mxu0 %v939_v3  ;;  %v951_v16 = vld [vmem:[#allocation5 + $0x18] sm:$0xff]   ;;  %v965_v29 = vld [vmem:[#allocation5 + $0xb0] sm:$0xff]  }
  0xc6   :  { %v80_v35 = vmul.f32 0.0013020834, %v78_v33  ;;  %v93_v36 = vmul.f32 %v1113_v30, %v1113_v30  ;;  %v94_v37 = vmul.f32 %v1115_v31, %v1115_v31  ;;  %v95_v39 = vmul.f32 %v1117_v32, %v1117_v32  ;;  %v941_v5 = vld [vmem:[#allocation5 + $0x80] sm:$0xff]   ;;  %887 = vmatprep.subr.bf16.mxu1 %v940_v4  ;;  %867 = vmatprep.subr.bf16.mxu0 %v942_v6  ;;  %v966_v33 = vld [vmem:[#allocation5 + $0x78] sm:$0xff]  }
  0xc7   :  { %v96_v45 = vmul.f32 %v1119_v34, %v1119_v34  ;;  %v97_v50 = vmul.f32 %v1125_v38, %v1125_v38  ;;  %v98_v55 = vmul.f32 %v1135_v44, %v1135_v44  ;;  %888 = vmatpush3.bf16.msra.mxu1 %v941_v5  ;;  %v955_v20 = vld [vmem:[#allocation5 + $0x20] sm:$0xff]  }
  0xc8   :  { %v105_v40 = vadd.f32 %v94_v37, %v93_v36  ;;  %v1129_v41 = vsub.f32 %v59_v9, %v80_v35  ;;  %v1131_v42 = vsub.f32 %v60_v10, %v80_v35  ;;  %v1133_v43 = vsub.f32 %v61_v13, %v80_v35  ;;  %v945_v9 = vld [vmem:[#allocation5 + $0x88] sm:$0xff]   ;;  %889 = vmatprep.subr.bf16.mxu1 %v944_v7  ;;  %v946_v10 = vld [vmem:[#allocation5 + $0x50] sm:$0xff]   ;;  %v967_v36 = vld [vmem:[#allocation5 + $0x38] sm:$0xff]  }
  0xc9   :  { %v1139_v47 = vsub.f32 %v62_v14, %v80_v35  ;;  %v1147_v52 = vsub.f32 %v63_v18, %v80_v35  ;;  %v1153_v57 = vsub.f32 %v64_v24, %v80_v35  ;;  %868 = vmatpush3.bf16.msra.mxu0 %v943_v8  ;;  %v949_v13 = vld [vmem:[#allocation5 + $0x90] sm:$0xff]   ;;  %v950_v14 = vld [vmem:[#allocation5 + $0x58] sm:$0xff]   ;;  %v954_v18 = vld [vmem:[#allocation5 + $0x60] sm:$0xff]  }
  0xca   :  { %v106_v46 = vadd.f32 %v105_v40, %v95_v39  ;;  %v99_v48 = vmul.f32 %v1129_v41, %v1129_v41  ;;  %v100_v49 = vmul.f32 %v1131_v42, %v1131_v42  ;;  %v101_v53 = vmul.f32 %v1133_v43, %v1133_v43  ;;  %869 = vmatprep.subr.bf16.mxu0 %v946_v10  ;;  %v959_v24 = vld [vmem:[#allocation5 + $0x28] sm:$0xff]   ;;  %v968_v35 = vld [vmem:[#allocation5 + $0xf8] sm:$0xff]   ;;  %v970_v39 = vld [vmem:[#allocation5 + $0x140] sm:$0xff]  }
  0xcb   :  { %v102_v58 = vmul.f32 %v1139_v47, %v1139_v47  ;;  %v103_v61 = vmul.f32 %v1147_v52, %v1147_v52  ;;  %v104_v63 = vmul.f32 %v1153_v57, %v1153_v57  ;;  %890 = vmatpush3.bf16.msra.mxu1 %v945_v9  ;;  %v969_v37 = vld [vmem:[#allocation5 + $0xb8] sm:$0xff]  }
  0xcc   :  { %v107_v51 = vadd.f32 %v106_v46, %v96_v45  ;;  %v112_v54 = vadd.f32 %v100_v49, %v99_v48  ;;  %891 = vmatprep.subr.bf16.mxu1 %v948_v11 }
  0xcd   :  { %870 = vmatpush3.bf16.msra.mxu0 %v947_v12 }
  0xce   :  { %v108_v56 = vadd.f32 %v107_v51, %v97_v50  ;;  %v113_v59 = vadd.f32 %v112_v54, %v101_v53  ;;  %871 = vmatprep.subr.bf16.mxu0 %v950_v14 }
  0xcf   :  { %892 = vmatpush3.bf16.msra.mxu1 %v949_v13 }
  0xd0   :  { %v109_v60 = vadd.f32 %v108_v56, %v98_v55  ;;  %v114_v62 = vadd.f32 %v113_v59, %v102_v58  ;;  %893 = vmatprep.subr.bf16.mxu1 %v952_v15 }
  0xd1   :  { %872 = vmatpush3.bf16.msra.mxu0 %v951_v16 }
  0xd2   :  { %110 = vadd.xlane.f32.xlu1 %v109_v60  ;;  %v115_v0 = vadd.f32 %v114_v62, %v103_v61  ;;  %873 = vmatprep.subr.bf16.mxu0 %v954_v18 }
  0xd3   :  { %894 = vmatpush3.bf16.msra.mxu1 %v953_v17 }
  0xd4   :  { %v116_v1 = vadd.f32 %v115_v0, %v104_v63  ;;  %895 = vmatprep.subr.bf16.mxu1 %v956_v19 }
  0xd5   :  { %874 = vmatpush3.bf16.msra.mxu0 %v955_v20 }
  0xd6   :  { %117 = vadd.xlane.f32.xlu1 %v116_v1  ;;  %875 = vmatprep.subr.bf16.mxu0 %v958_v22 }
  0xd7   :  { %896 = vmatpush3.bf16.msra.mxu1 %v957_v21 }
  0xd8   :  { %897 = vmatprep.subr.bf16.mxu1 %v960_v23 }
  0xd9   :  { %876 = vmatpush3.bf16.msra.mxu0 %v959_v24 }
  0xda   :  { %877 = vmatprep.subr.bf16.mxu0 %v962_v26 }
  0xdb   :  { %898 = vmatpush3.bf16.msra.mxu1 %v961_v25 }
  0xdc   :  { %899 = vmatprep.subr.bf16.mxu1 %v964_v27 }
  0xdd   :  { %878 = vmatpush3.bf16.msra.mxu0 %v963_v28 }
  0xde   :  { %879 = vmatprep.subr.bf16.mxu0 %v966_v33 }
  0xdf   :  { %900 = vmatpush3.bf16.msra.mxu1 %v965_v29 }
  0xe0   :  { %901 = vmatprep.subr.bf16.mxu1 %v968_v35 }
  0xe1   :  { %880 = vmatpush3.bf16.msra.mxu0 %v967_v36 }
  0xe2   :  { %909 = vmatprep.subr.bf16.mxu0 %v970_v39 }
  0xe3   :  { %902 = vmatpush3.bf16.msra.mxu1 %v969_v37 }
 0x15f   :  { %v111_v40 = vpop.xlane.xlu1 %110 }
 0x160   :  { %v119_v45 = vmul.f32 0.0013020834, %v111_v40 }
 0x162   :  { %v121_v46 = vadd.f32 1e-05, %v119_v45 }
 0x163   :  { %v118_v48 = vpop.xlane.xlu1 %117 }
 0x164   :  { %986 = vrsqrt.f32 %v121_v46  ;;  %v120_v49 = vmul.f32 0.0013020834, %v118_v48 }
 0x166   :  { %v122_v50 = vadd.f32 1e-05, %v120_v49 }
 0x168   :  { %988 = vrsqrt.f32 %v122_v50 }
 0x16e   :  { %v987_v51 = vpop.eup %986 }
 0x16f   :  { %v126_v53 = vmul.f32 %v987_v51, %v1115_v31  ;;  %v128_v54 = vmul.f32 %v987_v51, %v1119_v34  ;;  %v125_v55 = vmul.f32 %v987_v51, %v1113_v30  ;;  %v127_v56 = vmul.f32 %v987_v51, %v1117_v32 }
 0x170   :  { %v1166_v58 = vmul.f32 %v987_v51, %v1135_v44  ;;  %v1172_v1 = vmul.f32 %v987_v51, %v1125_v38 }
 0x171   :  { %v143_v59 = vrot.slane %v126_v53, 4  ;;  %v155_v60 = vrot.slane %v128_v54, 4  ;;  %v137_v61 = vrot.slane %v125_v55, 4  ;;  %v149_v62 = vrot.slane %v127_v56, 4 }
 0x172   :  { %v1168_v63 = vpop.eup %988  ;;  %v167_v0 = vrot.slane %v1166_v58, 4 }
 0x173   :  { %v132_v31 = vmul.f32 %v1168_v63, %v1131_v42  ;;  %v144_v30 = vadd.f32 %v143_v59, %v126_v53  ;;  %v134_v32 = vmul.f32 %v1168_v63, %v1139_v47  ;;  %v156_v34 = vadd.f32 %v155_v60, %v128_v54 }
 0x174   :  { %v131_v44 = vmul.f32 %v1168_v63, %v1129_v41  ;;  %v138_v2 = vadd.f32 %v137_v61, %v125_v55  ;;  %v133_v3 = vmul.f32 %v1168_v63, %v1133_v43  ;;  %v150_v4 = vadd.f32 %v149_v62, %v127_v56 }
 0x175   :  { %v145_v5 = vrot.slane %v144_v30, 2  ;;  %v179_v6 = vrot.slane %v132_v31, 4  ;;  %v157_v38 = vrot.slane %v156_v34, 2  ;;  %v191_v7 = vrot.slane %v134_v32, 4 }
 0x176   :  { %v139_v8 = vrot.slane %v138_v2, 2  ;;  %v173_v9 = vrot.slane %v131_v44, 4  ;;  %v151_v42 = vrot.slane %v150_v4, 2  ;;  %v185_v10 = vrot.slane %v133_v3, 4 }
 0x177   :  { %v146_v11 = vadd.f32 %v145_v5, %v144_v30  ;;  %v180_v12 = vadd.f32 %v179_v6, %v132_v31  ;;  %v158_v47 = vadd.f32 %v157_v38, %v156_v34  ;;  %v192_v13 = vadd.f32 %v191_v7, %v134_v32 }
 0x178   :  { %v140_v14 = vadd.f32 %v139_v8, %v138_v2  ;;  %v174_v15 = vadd.f32 %v173_v9, %v131_v44  ;;  %v152_v41 = vadd.f32 %v151_v42, %v150_v4  ;;  %v186_v16 = vadd.f32 %v185_v10, %v133_v3 }
 0x179   :  { %v147_v17 = vrot.slane %v146_v11, 1  ;;  %v181_v18 = vrot.slane %v180_v12, 2  ;;  %v159_v43 = vrot.slane %v158_v47, 1  ;;  %v193_v19 = vrot.slane %v192_v13, 2 }
 0x17a   :  { %v141_v20 = vrot.slane %v140_v14, 1  ;;  %v175_v21 = vrot.slane %v174_v15, 2  ;;  %v153_v22 = vrot.slane %v152_v41, 1  ;;  %v187_v23 = vrot.slane %v186_v16, 2 }
 0x17b   :  { %v148_v24 = vadd.f32 %v147_v17, %v146_v11  ;;  %v182_v25 = vadd.f32 %v181_v18, %v180_v12  ;;  %v160_v26 = vadd.f32 %v159_v43, %v158_v47  ;;  %v194_v27 = vadd.f32 %v193_v19, %v192_v13 }
 0x17c   :  { %v142_v28 = vadd.f32 %v141_v20, %v140_v14  ;;  %v176_v29 = vadd.f32 %v175_v21, %v174_v15  ;;  %v154_v33 = vadd.f32 %v153_v22, %v152_v41  ;;  %v188_v35 = vadd.f32 %v187_v23, %v186_v16  ;;  %v972_v22 = vld [vmem:[#allocation5 + $0x148] sm:$0xff]  }
 0x17d   :  { %v183_v36 = vrot.slane %v182_v25, 1  ;;  %v222_v37 = vmul.f32 0.125, %v148_v24  ;;  %v195_v39 = vrot.slane %v194_v27, 1  ;;  %v224_v40 = vmul.f32 0.125, %v160_v26 }
 0x17e   :  { %v177_v45 = vrot.slane %v176_v29, 1  ;;  %v221_v46 = vmul.f32 0.125, %v142_v28  ;;  %v189_v48 = vrot.slane %v188_v35, 1  ;;  %v223_v49 = vmul.f32 0.125, %v154_v33  ;;  %v974_v33 = vld [vmem:[#allocation5 + $0x150] sm:$0xff]  }
 0x17f   :  { %v184_v50 = vadd.f32 %v183_v36, %v182_v25  ;;  %v234_v51 = vpack.c.bf16 %v222_v37, %v222_v37  ;;  %v196_v53 = vadd.f32 %v195_v39, %v194_v27  ;;  %v236_v54 = vpack.c.bf16 %v224_v40, %v224_v40  ;;  %v973_v25 = vld [vmem:[#allocation5 + $0x108] sm:$0xff]   ;;  %v975_v37 = vld [vmem:[#allocation5 + $0x110] sm:$0xff]  }
 0x180   :  { %v178_v55 = vadd.f32 %v177_v45, %v176_v29  ;;  %v233_v56 = vpack.c.bf16 %v221_v46, %v221_v46  ;;  %v190_v59 = vadd.f32 %v189_v48, %v188_v35  ;;  %v235_v60 = vpack.c.bf16 %v223_v49, %v223_v49  ;;  %v976_v46 = vld [vmem:[#allocation5 + $0x158] sm:$0xff]  }
 0x181   :  { %v228_v61 = vmul.f32 0.125, %v184_v50  ;;  %v361_v62 = vunpack.c.l.b16 %v234_v51  ;;  %v230_v31 = vmul.f32 0.125, %v196_v53  ;;  %v161_v30 = vrot.slane %v1172_v1, 4  ;;  %v977_v50 = vld [vmem:[#allocation5 + $0x118] sm:$0xff]  }
 0x182   :  { %v363_v32 = vunpack.c.l.b16 %v236_v54  ;;  %v227_v34 = vmul.f32 0.125, %v178_v55  ;;  %v360_v44 = vunpack.c.l.b16 %v233_v56  ;;  %v229_v2 = vmul.f32 0.125, %v190_v59  ;;  %v978_v55 = vld [vmem:[#allocation5 + $0x160] sm:$0xff]  }
 0x183   :  { %v240_v3 = vpack.c.bf16 %v228_v61, %v228_v61  ;;  %v242_v4 = vpack.c.bf16 %v230_v31, %v230_v31  ;;  %v136_v5 = vmul.f32 %v1168_v63, %v1153_v57  ;;  %v168_v6 = vadd.f32 %v167_v0, %v1166_v58  ;;  %v979_v61 = vld [vmem:[#allocation5 + $0x120] sm:$0xff]   ;;  %v980_v31 = vld [vmem:[#allocation5 + $0x168] sm:$0xff]  }
 0x184   :  { %v239_v38 = vpack.c.bf16 %v227_v34, %v227_v34  ;;  %v241_v7 = vpack.c.bf16 %v229_v2, %v229_v2  ;;  %v362_v8 = vunpack.c.l.b16 %v235_v60  ;;  %v135_v9 = vmul.f32 %v1168_v63, %v1147_v52  ;;  %v971_v63 = vld [vmem:[#allocation5 + $0x100] sm:$0xff]  }
 0x185   :  { %v367_v42 = vunpack.c.l.b16 %v240_v3  ;;  %v369_v10 = vunpack.c.l.b16 %v242_v4  ;;  %v169_v11 = vrot.slane %v168_v6, 2  ;;  %v203_v12 = vrot.slane %v136_v5, 4  ;;  %v983_v3 = vld [vmem:[#allocation5 + $0x130] sm:$0xff]  }
 0x186   :  { %v366_v47 = vunpack.c.l.b16 %v239_v38  ;;  %v368_v13 = vunpack.c.l.b16 %v241_v7  ;;  %v162_v14 = vadd.f32 %v161_v30, %v1172_v1  ;;  %v197_v15 = vrot.slane %v135_v9, 4  ;;  %v985_v38 = vld [vmem:[#allocation5 + $0x138] sm:$0xff]  }
 0x187   :  { %v374_v57 = vsel %vm372_vm0, %v367_v42, %v361_v62  ;;  %v376_v41 = vsel %vm372_vm0, %v369_v10, %v363_v32  ;;  %v170_v58 = vadd.f32 %v169_v11, %v168_v6  ;;  %v204_v0 = vadd.f32 %v203_v12, %v136_v5  ;;  %v981_v32 = vld [vmem:[#allocation5 + $0x128] sm:$0xff]   ;;  %v984_v5 = vld [vmem:[#allocation5 + $0x178] sm:$0xff]   ;;  %v816_v11 = vld [vmem:[%s1214_s2] ss:$0 sm:$0xff]  ;;  %s1034_s2 = scalar_lea.vmem %s807_s14, 32 }
 0x188   :  { %v380_v16 = vpack.c.b16 %v374_v57, %v374_v57  ;;  %v382_v17 = vpack.c.b16 %v376_v41, %v376_v41  ;;  %v373_v18 = vsel %vm372_vm0, %v366_v47, %v360_v44  ;;  %v375_v52 = vsel %vm372_vm0, %v368_v13, %v362_v8  ;;  %v982_v44 = vld [vmem:[#allocation5 + $0x170] sm:$0xff]   ;;  %p1035_p2 = scmp.ne.s32.totalorder %s807_s14, %s1034_s2  ;;  %p1040_p4 = scmp.lt.s32.totalorder %s1034_s2, %s1034_s2 }
 0x189   :  { %v379_v43 = vpack.c.b16 %v373_v18, %v373_v18  ;;  %v381_v19 = vpack.c.b16 %v375_v52, %v375_v52  ;;  %v171_v20 = vrot.slane %v170_v58, 1  ;;  %v205_v21 = vrot.slane %v204_v0, 2 }
 0x18a   :  { %711 = vmatprep.mubr.bf16.mxu0 %v380_v16  ;;  %751 = vmatprep.mubr.bf16.mxu1 %v382_v17  ;;  %v198_v1 = vadd.f32 %v197_v15, %v135_v9  ;;  %v163_v26 = vrot.slane %v162_v14, 2  ;;  %p1041_p5 = por %p1040_p4, %p1039_p3 }
 0x18b   :  { %712 = vmatmul.mubr.bf16.vlgmr.msra.gmra.mrb[0].mxu0 %v379_v43  ;;  %752 = vmatmul.mubr.bf16.vlgmr.msra.gmra.mrb[0].mxu1 %v381_v19  ;;  %v172_v23 = vadd.f32 %v171_v20, %v170_v58  ;;  %v206_v24 = vadd.f32 %v205_v21, %v204_v0 }
 0x18c   :  { %910 = vmatpush3.bf16.msra.mxu0 %v971_v63  ;;  %v199_v27 = vrot.slane %v198_v1, 2  ;;  %v164_v39 = vadd.f32 %v163_v26, %v162_v14  ;;  %p1042_p6 = pnand %p1041_p5, %p1035_p2 }
 0x18d   :  { %v207_v28 = vrot.slane %v206_v24, 1  ;;  %v226_v29 = vmul.f32 0.125, %v172_v23  ;;  %911 = vmatprep.subr.bf16.mxu0 %v972_v22 }
 0x18e   :  { %v200_v35 = vadd.f32 %v199_v27, %v198_v1  ;;  %v165_v51 = vrot.slane %v164_v39, 1 }
 0x18f   :  { %v208_v36 = vadd.f32 %v207_v28, %v206_v24  ;;  %v238_v45 = vpack.c.bf16 %v226_v29, %v226_v29 }
 0x190   :  { %912 = vmatpush3.bf16.msra.mxu0 %v973_v25  ;;  %v201_v48 = vrot.slane %v200_v35, 1  ;;  %v166_v62 = vadd.f32 %v165_v51, %v164_v39 }
 0x191   :  { %v232_v40 = vmul.f32 0.125, %v208_v36  ;;  %913 = vmatprep.subr.bf16.mxu0 %v974_v33  ;;  %v365_v53 = vunpack.c.l.b16 %v238_v45 }
 0x192   :  { %v202_v56 = vadd.f32 %v201_v48, %v200_v35  ;;  %v225_v34 = vmul.f32 0.125, %v166_v62 }
 0x193   :  { %v244_v49 = vpack.c.bf16 %v232_v40, %v232_v40 }
 0x194   :  { %914 = vmatpush3.bf16.msra.mxu0 %v975_v37  ;;  %v231_v30 = vmul.f32 0.125, %v202_v56  ;;  %v237_v4 = vpack.c.bf16 %v225_v34, %v225_v34 }
 0x195   :  { %v371_v54 = vunpack.c.l.b16 %v244_v49  ;;  %915 = vmatprep.subr.bf16.mxu0 %v976_v46 }
 0x196   :  { %v243_v2 = vpack.c.bf16 %v231_v30, %v231_v30  ;;  %v364_v7 = vunpack.c.l.b16 %v237_v4 }
 0x197   :  { %v378_v59 = vsel %vm372_vm0, %v371_v54, %v365_v53 }
 0x198   :  { %v384_v60 = vpack.c.b16 %v378_v59, %v378_v59  ;;  %916 = vmatpush3.bf16.msra.mxu0 %v977_v50  ;;  %v370_v6 = vunpack.c.l.b16 %v243_v2 }
 0x199   :  { %917 = vmatprep.subr.bf16.mxu0 %v978_v55 }
 0x19a   :  { %791 = vmatprep.mubr.bf16.mxu0 %v384_v60  ;;  %v377_v8 = vsel %vm372_vm0, %v370_v6, %v364_v7 }
 0x19b   :  { %v383_v9 = vpack.c.b16 %v377_v8, %v377_v8 }
 0x19c   :  { %918 = vmatpush3.bf16.msra.mxu0 %v979_v61 }
 0x19d   :  { %919 = vmatprep.subr.bf16.mxu0 %v980_v31 }
 0x1a0   :  { %920 = vmatpush3.bf16.msra.mxu0 %v981_v32 }
 0x1a1   :  { %921 = vmatprep.subr.bf16.mxu0 %v982_v44 }
 0x1a4   :  { %922 = vmatpush3.bf16.msra.mxu0 %v983_v3 }
 0x1a5   :  { %923 = vmatprep.subr.bf16.mxu0 %v984_v5 }
 0x1a8   :  { %924 = vmatpush3.bf16.msra.mxu0 %v985_v38 }
 0x1ab   :  { %792 = vmatmul.mubr.bf16.vlgmr.msra.gmra.mrb[4].mxu0 %v383_v9 }
 0x25e   :  { %v881_v42 = vpop.f32.mrb[0].mxu0  ;;  %v903_v10 = vpop.f32.mrb[0].mxu1 }
 0x25f   :  { %v882_v12 = vpop.f32.mrb[1].mxu0  ;;  %v904_v47 = vpop.f32.mrb[1].mxu1 }
 0x260   :  { %v883_v13 = vadd.f32 %v882_v12, %v881_v42  ;;  %v905_v14 = vadd.f32 %v904_v47, %v903_v10  ;;  %v884_v15 = vpop.f32.mrb[2].mxu0  ;;  %v906_v57 = vpop.f32.mrb[2].mxu1 }
 0x261   :  { %v885_v41 = vpop.f32.mrb[3].mxu0  ;;  %v907_v58 = vpop.f32.mrb[3].mxu1 }
 0x262   :  { %v714_v0 = vadd.f32 %v883_v13, %v816_v11 }
 0x264   :  { %v754_v16 = vadd.f32 %v905_v14, %v714_v0 }
 0x27e   :  { %v925_v17 = vpop.f32.mrb[4].mxu0 }
 0x27f   :  { %v926_v18 = vpop.f32.mrb[5].mxu0 }
 0x280   :  { %v927_v52 = vadd.f32 %v926_v18, %v925_v17  ;;  %v928_v63 = vpop.f32.mrb[6].mxu0 }
 0x281   :  { %v929_v43 = vpop.f32.mrb[7].mxu0 }
 0x282   :  { %v794_v19 = vadd.f32 %v927_v52, %v754_v16 }
 0x284   :  { %799 = vst [vmem:[#allocation7] sm:$0x3] %v794_v19 }
 0x285   :  { %1045 = shalt.err (!%p1042_p6)
}
 0x286   :  { %s1046_s17 = scalar_lea.hbm %s1215_s3, 32 }
 0x287   :  { %p1047_p7 = scmp.ne.s32.totalorder %s1215_s3, %s1046_s17  ;;  %p1050_p8 = scmp.lt.u32.totalorder %s1046_s17, %s1215_s3 }
 0x289   :  { %p1052_p9 = pnand %p1050_p8, %p1047_p7 }
 0x28b   :  { %1055 = shalt.err (!%p1052_p9)
}
 0x28c   :  { %809 = dma.vmem_to_hbm [thread:$0]  %s807_s14, 32, %s1215_s3, [#allocation4]  }
 0x28d   :  { %1060 = dma.done.wait [#allocation4], 32  }
 0x28e   :  { %1061 = vsyncadd [#allocation4], 4294967264 }
 0x28f   :  { %813 = vsyncpa [#allocation3], 1 }
 0x290   :  { %814 = vsyncpa [#allocation6], 1 }
 0x291   :  { %815 = vsyncpa [#allocation4], 1 }

</bundles_post_ra>
